<compile_context>
chip_gen: v7x
topology: tpu7x:2x2x1
jax: 0.10.0
libtpu: 0.0.40
codegen_flags: <defaults>
</compile_context>

<pallas_src>
import functools

import jax
import jax.numpy as jnp
from jax.experimental import pallas as pl
from jax.experimental.pallas import tpu as pltpu


def _round_up(x: int, m: int) -> int:
    return ((x + m - 1) // m) * m


# ---------------------------------------------------------------------------
# Kernels
# ---------------------------------------------------------------------------
def _vdn_sum_packed_kernel(x_ref, o_ref, *, pack, n_agents):
    # x_ref: (TR, 128) lane-dense tile holding `pack` logical rows per
    # physical row (pack * n_agents == 128). Reduce each n_agents-wide
    # lane segment -> (TR, pack) output tile.
    x = x_ref[...].astype(jnp.float32)
    tr = x.shape[0]
    s = jnp.sum(x.reshape(tr, pack, n_agents), axis=-1)
    o_ref[...] = s.astype(o_ref.dtype)


def _vdn_sum_generic_kernel(x_ref, o_ref):
    # x_ref: (TR, N) tile; reduce over agents (last / lane axis).
    x = x_ref[...].astype(jnp.float32)
    o_ref[...] = jnp.sum(x, axis=-1, keepdims=True).astype(o_ref.dtype)


# ---------------------------------------------------------------------------
# Host-side paths
# ---------------------------------------------------------------------------
def _sum_last_packed(x2d, rows: int, n_agents: int):
    """Lane-dense path: requires 128 % n_agents == 0. Returns (rows, 1)."""
    dtype = x2d.dtype
    pack = 128 // n_agents

    rows_packed = -(-rows // pack)                     # ceil(rows / pack)
    tr = min(1024, _round_up(rows_packed, 8))          # 1024 rows ~ roofline
    rows_packed_pad = _round_up(rows_packed, tr)
    rows_pad = rows_packed_pad * pack

    if rows_pad != rows:
        x2d = jnp.pad(x2d, ((0, rows_pad - rows), (0, 0)))
    x_pack = x2d.reshape(rows_packed_pad, 128)         # contiguous flat view

    num_tiles = rows_packed_pad // tr
    itemsize = jnp.dtype(dtype).itemsize
    kernel = functools.partial(
        _vdn_sum_packed_kernel, pack=pack, n_agents=n_agents
    )

    out = pl.pallas_call(
        kernel,
        out_shape=jax.ShapeDtypeStruct((rows_packed_pad, pack), dtype),
        grid=(num_tiles,),
        in_specs=[pl.BlockSpec((tr, 128), lambda i: (i, 0))],
        out_specs=pl.BlockSpec((tr, pack), lambda i: (i, 0)),
        compiler_params=pltpu.CompilerParams(
            dimension_semantics=("parallel",)
        ),
        cost_estimate=pl.CostEstimate(
            flops=rows_pad * n_agents,
            transcendentals=0,
            bytes_accessed=rows_pad * n_agents * itemsize + rows_pad * itemsize,
        ),
    )(x_pack)

    return out.reshape(rows_pad)[:rows].reshape(rows, 1)


def _sum_last_generic(x2d, rows: int, n_agents: int):
    """Fallback path for arbitrary n_agents. Returns (rows, 1)."""
    dtype = x2d.dtype
    itemsize = jnp.dtype(dtype).itemsize

    # Keep double-buffered input tiles to a few MiB even for wide N.
    tr_cap = max(8, ((4 * 1024 * 1024) // max(1, n_agents * itemsize)) // 8 * 8)
    tr = min(512, tr_cap, _round_up(rows, 8))
    rows_pad = _round_up(rows, tr)

    if rows_pad != rows:
        x2d = jnp.pad(x2d, ((0, rows_pad - rows), (0, 0)))
    num_tiles = rows_pad // tr

    out = pl.pallas_call(
        _vdn_sum_generic_kernel,
        out_shape=jax.ShapeDtypeStruct((rows_pad, 1), dtype),
        grid=(num_tiles,),
        in_specs=[pl.BlockSpec((tr, n_agents), lambda i: (i, 0))],
        out_specs=pl.BlockSpec((tr, 1), lambda i: (i, 0)),
        compiler_params=pltpu.CompilerParams(
            dimension_semantics=("parallel",)
        ),
        cost_estimate=pl.CostEstimate(
            flops=rows_pad * n_agents,
            transcendentals=0,
            bytes_accessed=rows_pad * n_agents * itemsize + rows_pad * itemsize,
        ),
    )(x2d)

    return out[:rows]


# ---------------------------------------------------------------------------
# Public forward (matches VDNMixerNetwork.forward)
# ---------------------------------------------------------------------------
def vdn_mixer_forward(agent_q_values: jax.Array) -> jax.Array:
    orig_shape = agent_q_values.shape
    n_agents = orig_shape[-1]
    rows = 1
    for d in orig_shape[:-1]:
        rows *= d

    x2d = agent_q_values.reshape(rows, n_agents)

    if n_agents <= 128 and 128 % n_agents == 0:
        out2d = _sum_last_packed(x2d, rows, n_agents)
    else:
        out2d = _sum_last_generic(x2d, rows, n_agents)

    # torch.sum(..., dim=-1, keepdim=True) -> shape orig_shape[:-1] + (1,)
    out = out2d.reshape(orig_shape[:-1] + (1,))
    # .squeeze(1): drop axis 1 only if it has size 1 (torch semantics).
    if out.ndim > 1 and out.shape[1] == 1:
        out = jnp.squeeze(out, axis=1)
    return out


# ---------------------------------------------------------------------------
# Self-test
# ---------------------------------------------------------------------------
if __name__ == "__main__":
    key = jax.random.PRNGKey(0)
    k0, k1, k2 = jax.random.split(key, 3)

    def ref_fn(x):
        r = jnp.sum(x, axis=-1, keepdims=True)
        if r.ndim > 1 and r.shape[1] == 1:
            r = jnp.squeeze(r, axis=1)
        return r

    # 1) Canonical module shape: [batch, dummy time dim, n_agents].
    B, T, N = 2, 1, 8
    x = jax.random.normal(k0, (B, T, N), dtype=jnp.float32)
    out = jax.block_until_ready(vdn_mixer_forward(x))
    ref = ref_fn(x)
    assert out.shape == ref.shape, (out.shape, ref.shape)
    assert jnp.allclose(out, ref, atol=1e-5), "mismatch (packed path, small)"

    # 2) Larger, non-pack-aligned batch -> exercises padding + multi-tile grid.
    x2 = jax.random.normal(k1, (37, 1, 8), dtype=jnp.float32)
    out2 = jax.block_until_ready(vdn_mixer_forward(x2))
    ref2 = ref_fn(x2)
    assert out2.shape == ref2.shape
    assert jnp.allclose(out2, ref2, atol=1e-5), "mismatch (packed path, padded)"

    # 3) n_agents that does not divide 128 -> exercises the generic path.
    x3 = jax.random.normal(k2, (6, 1, 5), dtype=jnp.float32)
    out3 = jax.block_until_ready(vdn_mixer_forward(x3))
    ref3 = ref_fn(x3)
    assert out3.shape == ref3.shape
    assert jnp.allclose(out3, ref3, atol=1e-5), "mismatch (generic path)"

    print("KERNEL_OK")
</pallas_src>

<mosaic_0001>
module attributes {stable_mosaic.version = 11 : i64} {
  func.func @_vdn_sum_packed_kernel(%arg0: i32, %arg1: memref<8x128xf32, #tpu.memory_space<vmem>>, %arg2: memref<8x16xf32, #tpu.memory_space<vmem>>) attributes {dimension_semantics = [#tpu.dimension_semantics<parallel>], iteration_bounds = array<i64: 1>, scalar_prefetch = 0 : i64, scratch_operands = 0 : i64, tpu.core_type = #tpu.core_type<tc>, window_params = [{transform_indices = @transform_0, window_bounds = array<i64: 8, 128>}, {transform_indices = @transform_1, window_bounds = array<i64: 8, 16>}]} {
    %c0 = arith.constant 0 : index
    %c0_0 = arith.constant 0 : index
    %0 = vector.load %arg1[%c0, %c0_0] : memref<8x128xf32, #tpu.memory_space<vmem>>, vector<8x128xf32>
    %1 = vector.shape_cast %0 : vector<8x128xf32> to vector<8x16x8xf32>
    %cst = arith.constant dense<0.000000e+00> : vector<8x16xf32>
    %2 = vector.multi_reduction <add>, %1, %cst [2] : vector<8x16x8xf32> to vector<8x16xf32>
    %c0_1 = arith.constant 0 : index
    %c0_2 = arith.constant 0 : index
    %3 = vector.load %arg2[%c0_1, %c0_2] : memref<8x16xf32, #tpu.memory_space<vmem>>, vector<8x16xf32>
    tpu.vector_store %arg2[%c0_1, %c0_2], %2 {strides = array<i32>} : memref<8x16xf32, #tpu.memory_space<vmem>>, vector<8x16xf32>,
    return
  }
  func.func @transform_0(%arg0: i32) -> (i32, i32) {
    %c0_i32 = arith.constant 0 : i32
    %c0_i32_0 = arith.constant 0 : i32
    return %arg0, %c0_i32 : i32, i32
  }
  func.func @transform_1(%arg0: i32) -> (i32, i32) {
    %c0_i32 = arith.constant 0 : i32
    %c0_i32_0 = arith.constant 0 : i32
    return %arg0, %c0_i32 : i32, i32
  }
}

</mosaic_0001>

<bundles_post_ra>
// kernel: tpu_custom_call.1
= control target key start
LH: loop header
LB: loop body
LE: loop exit
PB: predicated region body
PF: predicated region fallthrough
CT: control target
= control target key end

     0   :  { %6 = vsyncpa [#allocation3], 0  ;;  %s748_s0 = inlined_call_operand.hbm [shape: f32[8,128], index: 0, kind: input, shape index: {}]   ;;  %s749_s1 = inlined_call_operand.hbm [shape: f32[8,16], index: 1, kind: output, shape index: {}]  }
   0x1   :  { %7 = vsyncpa [#allocation4], 0  ;;  %s580_s6 = smov [#allocation2]   ;;  %s532_s10 = scalar_lea.hbm %s748_s0, 128 }
   0x2   :  { %s14_s7 = sshll.u32 %s580_s6, 4  ;;  %p533_p0 = scmp.ne.s32.totalorder %s748_s0, %s532_s10  ;;  %s15_s7 = int_to_ptr.vmem [resolvable:$true] %s14_s7 }
   0x3   :  { %p536_p1 = scmp.lt.u32.totalorder %s532_s10, %s748_s0 }
   0x5   :  { %p538_p2 = pnand %p536_p1, %p533_p0 }
   0x7   :  { %541 = shalt.err (!%p538_p2)
}
   0x8   :  { %s542_s15 = scalar_lea.vmem %s15_s7, 128  ;;  %p547_p4 = scmp.lt.s32.totalorder %s15_s7, %s15_s7 }
   0x9   :  { %p543_p3 = scmp.ne.s32.totalorder %s15_s7, %s542_s15  ;;  %p548_p5 = scmp.lt.s32.totalorder %s542_s15, %s542_s15 }
   0xb   :  { %p549_p6 = por %p548_p5, %p547_p4 }
   0xd   :  { %p550_p7 = pnand %p549_p6, %p543_p3 }
   0xf   :  { %553 = shalt.err (!%p550_p7)
}
  0x10   :  { %17 = dma.hbm_to_vmem [thread:$0]  %s748_s0, 128, %s15_s7, [#allocation3]  }
  0x11   :  { %576 = dma.done.wait [#allocation3], 128  }
  0x12   :  { %577 = vsyncadd [#allocation3], 4294967168  ;;  %v621_v0 = vld [vmem:[#allocation2] sm:$0xff]  ;;  %s581_s18 = smov 104   ;;  %s582_s19 = smov 120   ;;  %v73_v5 = vlaneseq  ;;  %vm340_vm0 = vcmask 64512  }
  0x13   :  { %29 = vrot.lane.b32.xlu1 %v621_v0, %s581_s18  ;;  %23 = vrot.lane.b32.xlu0 %v621_v0, %s582_s19  ;;  %s583_s20 = smov 96   ;;  %s584_s21 = smov 112   ;;  %v596_v3 = vmov 1983009808   ;;  %v597_v11 = vmov 1934713408  }
  0x14   :  { %s585_s22 = smov 80   ;;  %s586_s0 = smov 88   ;;  %v71_v4 = vunpack.c.l.s4 %v596_v3  ;;  %v647_v9 = vshrl.u32 %v73_v5, 7  ;;  %v135_v12 = vunpack.c.l.s4 %v597_v11  ;;  %vm416_vm1 = vcmask 130112  }
  0x15   :  { %s587_s23 = smov 64   ;;  %s588_s24 = smov 72   ;;  %vm481_vm2 = vcmask 1041409   ;;  %vm483_vm3 = vcmask 1042434   ;;  %vm485_vm4 = vcmask 1043459   ;;  %vm487_vm5 = vcmask 1044484  }
  0x16   :  { %s589_s25 = smov 48   ;;  %s590_s26 = smov 56   ;;  %v72_v8 = vunpack.c.0.s8 %v71_v4  ;;  %v136_v19 = vunpack.c.0.s8 %v135_v12  ;;  %vm489_vm6 = vcmask 1045509   ;;  %vm491_vm7 = vcmask 1046534  }
  0x17   :  { %32 = vrot.lane.b32.xlu1 %v621_v0, %s583_s20  ;;  %26 = vrot.lane.b32.xlu0 %v621_v0, %s584_s21  ;;  %s591_s27 = smov 32   ;;  %s592_s28 = smov 40   ;;  %vm493_vm8 = vcmask 1047559   ;;  %vm496_vm9 = vcmask 130048  }
  0x18   :  { %s593_s29 = smov 16   ;;  %s594_s30 = smov 24   ;;  %v654_v15 = vsub.s32 %v72_v8, %v647_v9  ;;  %v671_v27 = vsub.s32 %v136_v19, %v647_v9 }
  0x19   :  { %s595_s2 = smov 8   ;;  %s598_s3 = smov [#allocation5]  }
  0x1a   :  { %s504_s4 = sshll.u32 %s598_s3, 4  ;;  %s505_s4 = int_to_ptr.vmem [resolvable:$true] %s504_s4 }
  0x1b   :  { %38 = vrot.lane.b32.xlu1 %v621_v0, %s585_s22  ;;  %35 = vrot.lane.b32.xlu0 %v621_v0, %s586_s0  ;;  %s554_s5 = scalar_lea.vmem %s505_s4, 128  ;;  %p559_p9 = scmp.lt.s32.totalorder %s505_s4, %s505_s4 }
  0x1c   :  { %p555_p8 = scmp.ne.s32.totalorder %s505_s4, %s554_s5  ;;  %p560_p10 = scmp.lt.s32.totalorder %s554_s5, %s554_s5 }
  0x1e   :  { %p561_p11 = por %p560_p10, %p559_p9 }
  0x1f   :  { %44 = vrot.lane.b32.xlu1 %v621_v0, %s587_s23  ;;  %41 = vrot.lane.b32.xlu0 %v621_v0, %s588_s24 }
  0x20   :  { %p562_p12 = pnand %p561_p11, %p555_p8 }
  0x23   :  { %50 = vrot.lane.b32.xlu1 %v621_v0, %s589_s25  ;;  %47 = vrot.lane.b32.xlu0 %v621_v0, %s590_s26 }
  0x27   :  { %56 = vrot.lane.b32.xlu1 %v621_v0, %s591_s27  ;;  %53 = vrot.lane.b32.xlu0 %v621_v0, %s592_s28 }
  0x2b   :  { %62 = vrot.lane.b32.xlu1 %v621_v0, %s593_s29  ;;  %59 = vrot.lane.b32.xlu0 %v621_v0, %s594_s30 }
  0x2f   :  { %65 = vrot.lane.b32.xlu0 %v621_v0, %s595_s2 }
  0x85   :  { %v638_v1 = vpop.permute.xlu1 %29  ;;  %v640_v2 = vpop.permute.xlu0 %23 }
  0x86   :  { %v84_v16 = vcombine.low %v640_v2, %v638_v1  ;;  %v85_v55 = vcombine.high %v640_v2, %v638_v1 }
  0x88   :  { %v664_v22 = vrot.slane %v84_v16, %v654_v15 }
  0x89   :  { %v642_v6 = vpop.permute.xlu1 %32  ;;  %v644_v7 = vpop.permute.xlu0 %26 }
  0x8a   :  { %v68_v10 = vcombine.low %v621_v0, %v644_v7  ;;  %v69_v63 = vcombine.high %v621_v0, %v644_v7 }
  0x8c   :  { %v659_v17 = vrot.slane %v68_v10, %v654_v15 }
  0x8d   :  { %v651_v13 = vpop.permute.xlu1 %38  ;;  %v36_v14 = vpop.permute.xlu0 %35 }
  0x8e   :  { %v100_v18 = vcombine.low %v642_v6, %v651_v13  ;;  %v132_v24 = vcombine.low %v659_v17, %v664_v22  ;;  %v133_v3 = vcombine.high %v659_v17, %v664_v22  ;;  %v101_v1 = vcombine.high %v642_v6, %v651_v13 }
  0x8f   :  { %v99_v22 = vrot.slane %v85_v55, %v654_v15 }
  0x90   :  { %v108_v25 = vrot.slane %v100_v18, %v654_v15  ;;  %v140_v31 = vrot.slane %v132_v24, %v671_v27  ;;  %v83_v18 = vrot.slane %v69_v63, %v654_v15  ;;  %v115_v19 = vrot.slane %v101_v1, %v654_v15 }
  0x91   :  { %v45_v20 = vpop.permute.xlu1 %44  ;;  %v42_v21 = vpop.permute.xlu0 %41 }
  0x92   :  { %v116_v23 = vcombine.low %v36_v14, %v42_v21  ;;  %v117_v56 = vcombine.high %v36_v14, %v42_v21 }
  0x94   :  { %v124_v26 = vrot.slane %v116_v23, %v654_v15  ;;  %v131_v12 = vrot.slane %v117_v56, %v654_v15 }
  0x95   :  { %v51_v28 = vpop.permute.xlu1 %50  ;;  %v48_v29 = vpop.permute.xlu0 %47 }
  0x96   :  { %v164_v30 = vcombine.low %v108_v25, %v124_v26  ;;  %v204_v40 = vcombine.low %v45_v20, %v51_v28  ;;  %v165_v57 = vcombine.high %v108_v25, %v124_v26  ;;  %v205_v58 = vcombine.high %v45_v20, %v51_v28 }
  0x97   :  { %v147_v20 = vrot.slane %v133_v3, %v671_v27  ;;  %v180_v23 = vcombine.low %v115_v19, %v131_v12 }
  0x98   :  { %v172_v32 = vrot.slane %v164_v30, %v671_v27  ;;  %v212_v44 = vrot.slane %v204_v40, %v654_v15  ;;  %v219_v14 = vrot.slane %v205_v58, %v654_v15  ;;  %v179_v0 = vrot.slane %v165_v57, %v671_v27 }
  0x99   :  { %v57_v33 = vpop.permute.xlu1 %56  ;;  %v54_v34 = vpop.permute.xlu0 %53  ;;  %v148_v30 = vcombine.low %v83_v18, %v99_v22 }
  0x9a   :  { %v196_v35 = vcombine.low %v140_v31, %v172_v32  ;;  %v220_v36 = vcombine.low %v48_v29, %v54_v34  ;;  %v221_v50 = vcombine.high %v48_v29, %v54_v34  ;;  %v197_v16 = vcombine.high %v140_v31, %v172_v32 }
  0x9b   :  { %v198_v24 = vcombine.low %v147_v20, %v179_v0  ;;  %v199_v32 = vcombine.high %v147_v20, %v179_v0 }
  0x9c   :  { %v341_v37 = vsel %vm340_vm0, %v196_v35, 0.0  ;;  %v228_v41 = vrot.slane %v220_v36, %v654_v15  ;;  %v235_v2 = vrot.slane %v221_v50, %v654_v15  ;;  %v347_v26 = vsel %vm340_vm0, %v197_v16, 0.0 }
  0x9d   :  { %v63_v38 = vpop.permute.xlu1 %62  ;;  %342 = vadd.xlane.f32.xlu1 %v341_v37  ;;  %v60_v39 = vpop.permute.xlu0 %59  ;;  %v353_v35 = vsel %vm340_vm0, %v198_v24, 0.0  ;;  %v156_v37 = vrot.slane %v148_v30, %v671_v27 }
  0x9e   :  { %v236_v42 = vcombine.low %v57_v33, %v63_v38  ;;  %v268_v46 = vcombine.low %v212_v44, %v228_v41  ;;  %v269_v51 = vcombine.high %v212_v44, %v228_v41  ;;  %v237_v52 = vcombine.high %v57_v33, %v63_v38 }
  0x9f   :  { %v284_v21 = vcombine.low %v219_v14, %v235_v2  ;;  %v188_v33 = vrot.slane %v180_v23, %v671_v27  ;;  %v285_v38 = vcombine.high %v219_v14, %v235_v2 }
  0xa0   :  { %v244_v47 = vrot.slane %v236_v42, %v654_v15  ;;  %v276_v60 = vrot.slane %v268_v46, %v671_v27  ;;  %v251_v4 = vrot.slane %v237_v52, %v654_v15  ;;  %v283_v11 = vrot.slane %v269_v51, %v671_v27 }
  0xa1   :  { %v66_v43 = vpop.permute.xlu0 %65  ;;  %v292_v31 = vrot.slane %v284_v21, %v671_v27  ;;  %v200_v40 = vcombine.low %v156_v37, %v188_v33  ;;  %v359_v42 = vsel %vm340_vm0, %v199_v32, 0.0  ;;  %v299_v46 = vrot.slane %v285_v38, %v671_v27 }
  0xa2   :  { %v252_v45 = vcombine.low %v60_v39, %v66_v43  ;;  %v253_v48 = vcombine.high %v60_v39, %v66_v43  ;;  %v181_v39 = vcombine.high %v115_v19, %v131_v12  ;;  %v201_v51 = vcombine.high %v156_v37, %v188_v33 }
  0xa4   :  { %v260_v49 = vrot.slane %v252_v45, %v654_v15  ;;  %v267_v59 = vrot.slane %v253_v48, %v654_v15  ;;  %v149_v45 = vcombine.high %v83_v18, %v99_v22 }
  0xa6   :  { %v300_v53 = vcombine.low %v244_v47, %v260_v49  ;;  %v301_v54 = vcombine.high %v244_v47, %v260_v49  ;;  %v316_v7 = vcombine.low %v251_v4, %v267_v59  ;;  %v317_v34 = vcombine.high %v251_v4, %v267_v59 }
  0xa7   :  { %v195_v47 = vrot.slane %v181_v39, %v671_v27  ;;  %v365_v49 = vsel %vm340_vm0, %v200_v40, 0.0  ;;  %v163_v52 = vrot.slane %v149_v45, %v671_v27  ;;  %v406_v4 = vand.u32 127, %v73_v5 }
  0xa8   :  { %v308_v61 = vrot.slane %v300_v53, %v671_v27  ;;  %v315_v62 = vrot.slane %v301_v54, %v671_v27  ;;  %v324_v29 = vrot.slane %v316_v7, %v671_v27  ;;  %v331_v44 = vrot.slane %v317_v34, %v671_v27 }
  0xa9   :  { %v371_v54 = vsel %vm340_vm0, %v201_v51, 0.0  ;;  %v202_v56 = vcombine.low %v163_v52, %v195_v47  ;;  %v203_v59 = vcombine.high %v163_v52, %v195_v47  ;;  %v409_v16 = vsub.s32 %v406_v4, %v647_v9 }
  0xaa   :  { %v333_v8 = vcombine.high %v276_v60, %v308_v61  ;;  %v332_v10 = vcombine.low %v276_v60, %v308_v61  ;;  %v334_v13 = vcombine.low %v283_v11, %v315_v62  ;;  %v335_v28 = vcombine.high %v283_v11, %v315_v62 }
  0xab   :  { %v336_v36 = vcombine.low %v292_v31, %v324_v29  ;;  %v337_v43 = vcombine.high %v292_v31, %v324_v29  ;;  %v338_v50 = vcombine.low %v299_v46, %v331_v44  ;;  %v339_v55 = vcombine.high %v299_v46, %v331_v44 }
  0xac   :  { %v350_v17 = vsel %vm340_vm0, %v333_v8, 0.0  ;;  %v344_v6 = vsel %vm340_vm0, %v332_v10, 0.0  ;;  %v356_v25 = vsel %vm340_vm0, %v334_v13, 0.0  ;;  %v362_v15 = vsel %vm340_vm0, %v335_v28, 0.0 }
  0xad   :  { %351 = vadd.xlane.f32.xlu1 %v350_v17  ;;  %345 = vadd.xlane.f32.xlu0 %v344_v6  ;;  %v368_v41 = vsel %vm340_vm0, %v336_v36, 0.0  ;;  %v374_v48 = vsel %vm340_vm0, %v337_v43, 0.0  ;;  %v380_v53 = vsel %vm340_vm0, %v338_v50, 0.0  ;;  %v386_v57 = vsel %vm340_vm0, %v339_v55, 0.0 }
  0xae   :  { %v377_v58 = vsel %vm340_vm0, %v202_v56, 0.0  ;;  %v383_v60 = vsel %vm340_vm0, %v203_v59, 0.0  ;;  %v411_v11 = vadd.s32 4294967288, %v406_v4 }
  0xb0   :  { %v414_v0 = vsub.s32 %v411_v11, %v647_v9 }
  0xb1   :  { %357 = vadd.xlane.f32.xlu1 %v356_v25  ;;  %348 = vadd.xlane.f32.xlu0 %v347_v26 }
  0xb5   :  { %363 = vadd.xlane.f32.xlu1 %v362_v15  ;;  %354 = vadd.xlane.f32.xlu0 %v353_v35 }
  0xb9   :  { %369 = vadd.xlane.f32.xlu1 %v368_v41  ;;  %360 = vadd.xlane.f32.xlu0 %v359_v42 }
  0xbd   :  { %375 = vadd.xlane.f32.xlu1 %v374_v48  ;;  %366 = vadd.xlane.f32.xlu0 %v365_v49 }
  0xc1   :  { %381 = vadd.xlane.f32.xlu1 %v380_v53  ;;  %372 = vadd.xlane.f32.xlu0 %v371_v54 }
  0xc5   :  { %387 = vadd.xlane.f32.xlu1 %v386_v57  ;;  %378 = vadd.xlane.f32.xlu0 %v377_v58 }
  0xc9   :  { %384 = vadd.xlane.f32.xlu0 %v383_v60 }
 0x12a   :  { %v343_v61 = vpop.xlane.xlu1 %342 }
 0x12b   :  { %v410_v22 = vrot.slane %v343_v61, %v409_v16 }
 0x13a   :  { %v352_v27 = vpop.xlane.xlu1 %351  ;;  %v346_v62 = vpop.xlane.xlu0 %345 }
 0x13b   :  { %v425_v18 = vrot.slane %v352_v27, %v414_v0  ;;  %v415_v19 = vrot.slane %v346_v62, %v414_v0 }
 0x13d   :  { %v417_v29 = vsel %vm416_vm1, %v415_v19, %v410_v22 }
 0x13e   :  { %v358_v63 = vpop.xlane.xlu1 %357  ;;  %v349_v3 = vpop.xlane.xlu0 %348 }
 0x13f   :  { %v421_v7 = vrot.slane %v349_v3, %v409_v16  ;;  %v434_v21 = vrot.slane %v358_v63, %v414_v0 }
 0x141   :  { %v426_v23 = vsel %vm416_vm1, %v425_v18, %v421_v7 }
 0x142   :  { %v364_v1 = vpop.xlane.xlu1 %363  ;;  %v355_v2 = vpop.xlane.xlu0 %354  ;;  %v482_v33 = vsel %vm481_vm2, %v426_v23, %v417_v29 }
 0x143   :  { %v430_v17 = vrot.slane %v355_v2, %v409_v16  ;;  %v443_v24 = vrot.slane %v364_v1, %v414_v0 }
 0x145   :  { %v435_v26 = vsel %vm416_vm1, %v434_v21, %v430_v17 }
 0x146   :  { %v370_v8 = vpop.xlane.xlu1 %369  ;;  %v361_v10 = vpop.xlane.xlu0 %360  ;;  %v484_v36 = vsel %vm483_vm3, %v435_v26, %v482_v33 }
 0x147   :  { %v439_v20 = vrot.slane %v361_v10, %v409_v16  ;;  %v452_v9 = vrot.slane %v370_v8, %v414_v0 }
 0x149   :  { %v444_v30 = vsel %vm416_vm1, %v443_v24, %v439_v20 }
 0x14a   :  { %v376_v12 = vpop.xlane.xlu1 %375  ;;  %v367_v14 = vpop.xlane.xlu0 %366  ;;  %v486_v38 = vsel %vm485_vm4, %v444_v30, %v484_v36 }
 0x14b   :  { %v448_v5 = vrot.slane %v367_v14, %v409_v16  ;;  %v461_v31 = vrot.slane %v376_v12, %v414_v0 }
 0x14d   :  { %v453_v34 = vsel %vm416_vm1, %v452_v9, %v448_v5 }
 0x14e   :  { %v382_v6 = vpop.xlane.xlu1 %381  ;;  %v373_v13 = vpop.xlane.xlu0 %372  ;;  %v488_v41 = vsel %vm487_vm5, %v453_v34, %v486_v38 }
 0x14f   :  { %v457_v25 = vrot.slane %v373_v13, %v409_v16  ;;  %v470_v15 = vrot.slane %v382_v6, %v414_v0 }
 0x151   :  { %v462_v37 = vsel %vm416_vm1, %v461_v31, %v457_v25 }
 0x152   :  { %v379_v28 = vpop.xlane.xlu0 %378  ;;  %v388_v35 = vpop.xlane.xlu1 %387  ;;  %v490_v44 = vsel %vm489_vm6, %v462_v37, %v488_v41 }
 0x153   :  { %v466_v32 = vrot.slane %v379_v28, %v409_v16  ;;  %v479_v42 = vrot.slane %v388_v35, %v414_v0 }
 0x155   :  { %v471_v39 = vsel %vm416_vm1, %v470_v15, %v466_v32 }
 0x156   :  { %v385_v40 = vpop.xlane.xlu0 %384  ;;  %v492_v46 = vsel %vm491_vm7, %v471_v39, %v490_v44 }
 0x157   :  { %v475_v43 = vrot.slane %v385_v40, %v409_v16 }
 0x159   :  { %v480_v45 = vsel %vm416_vm1, %v479_v42, %v475_v43 }
 0x15a   :  { %v494_v47 = vsel %vm493_vm8, %v480_v45, %v492_v46 }
 0x15b   :  { %497 = vst.msk [vmem:[#allocation5] sm:$0xff] %vm496_vm9, %v494_v47 }
 0x15c   :  { %565 = shalt.err (!%p562_p12)
}
 0x15d   :  { %s566_s8 = scalar_lea.hbm %s749_s1, 128 }
 0x15e   :  { %p567_p13 = scmp.ne.s32.totalorder %s749_s1, %s566_s8  ;;  %p570_p0 = scmp.lt.u32.totalorder %s566_s8, %s749_s1 }
 0x160   :  { %p572_p1 = pnand %p570_p0, %p567_p13 }
 0x162   :  { %575 = shalt.err (!%p572_p1)
}
 0x163   :  { %507 = dma.vmem_to_hbm [thread:$0]  %s505_s4, 128, %s749_s1, [#allocation4]  }
 0x164   :  { %578 = dma.done.wait [#allocation4], 128  }
 0x165   :  { %579 = vsyncadd [#allocation4], 4294967168 }
 0x166   :  { %511 = vsyncpa [#allocation3], 1 }
 0x167   :  { %512 = vsyncpa [#allocation4], 1 }

</bundles_post_ra>
